<compile_context>
chip_gen: v6e
topology: v6e:2x2x1
jax: 0.10.0
libtpu: 0.0.40
codegen_flags: <defaults>
</compile_context>

<pallas_src>
import functools

import jax
import jax.numpy as jnp
from jax.experimental import pallas as pl
from jax.experimental.pallas import tpu as pltpu


def _round_up(x, m):
    return ((x + m - 1) // m) * m


# ----------------------------------------------------------------------------
# Pallas kernels
# ----------------------------------------------------------------------------
def _make_wavelet_pool_kernel(chunk_len, pool_scales, feat):
    """One fused kernel producing every pooled scale (>1) hierarchically.

    Per grid step (one batch element x one seq chunk) the kernel reads the
    [chunk_len, feat] block once and emits one output per scale; scale 2k is
    derived from the scale-k result.  Pooling = adds + scale (VPU), no MXU.
    """

    def kernel(x_ref, *o_refs):
        # level-1 halving streamed straight from the ref with stride-2 sublane
        # slices: no full-block materialization, no (n, 2, F) relayout for the
        # largest level (kernel is HBM-bound; VPU adds are free).
        n1 = chunk_len // 2
        cur = (x_ref[pl.ds(0, n1, stride=2), :]
               + x_ref[pl.ds(1, n1, stride=2), :]) * 0.5
        cur_len = n1
        prev_scale = 2
        for o_ref, scale in zip(o_refs, pool_scales):
            factor = scale // prev_scale          # power of two by construction
            while factor > 1:
                n = cur_len // 2
                # avg_pool1d(kernel=stride=2) with remainder truncation
                cur = jnp.mean(cur[: 2 * n, :].reshape(n, 2, feat), axis=1)
                cur_len = n
                factor //= 2
            o_ref[...] = cur
            prev_scale = scale

    return kernel


def _backbone_quantile_kernel(x_ref, m_ref, w1d_ref, w1m_ref, b1_ref,
                              w2q_ref, b2q_ref, o_ref):
    # decoder-feature / time-mark concat folded into the kernel:
    #   h = x @ w1_dec + m @ w1_mark + b1   (bf16 operands, f32 MXU accumulate)
    h = (
        jnp.dot(x_ref[...], w1d_ref[...], preferred_element_type=jnp.float32)
        + jnp.dot(m_ref[...], w1m_ref[...], preferred_element_type=jnp.float32)
        + b1_ref[...]
    )
    # TODO(synk): torch nn.GELU defaults to exact erf; tanh approximation kept
    # here (EUP-friendly, matches the acknowledged backbone stand-in).
    h = jax.nn.gelu(h, approximate=True)
    # NOTE: the second matmul is the only MXU-relevant work; choose d_model as
    # a multiple of 256 (v6e/v7x) / 128 (v5e) in production to avoid ragged K.
    o_ref[...] = (
        jnp.dot(h.astype(w2q_ref.dtype), w2q_ref[...],
                preferred_element_type=jnp.float32)
        + b2q_ref[...]
    ).astype(o_ref.dtype)


# ----------------------------------------------------------------------------
# BlockSpec helpers
# ----------------------------------------------------------------------------
def _const_weight_spec(shape):
    """Constant-index weight block; single-buffered when supported so only one
    weight copy lives in VMEM (matters on v7x's 64 MiB)."""
    index_map = lambda i: (0,) * len(shape)
    try:
        return pl.BlockSpec(shape, index_map, pipeline_mode=pl.Buffered(1))
    except (TypeError, AttributeError):
        # TODO(synk): jax versions without BlockSpec(pipeline_mode=...) fall
        # back to the default double-buffered weight blocks.
        return pl.BlockSpec(shape, index_map)


def _pick_row_tile(n):
    if n <= 8:
        return n
    # >=2 parallel grid steps (v7x has 2 TensorCores), rows a multiple of 8,
    # capped at 1024 (large tiles amortize the ~0.35us/step overhead on
    # v5e/v6e and still fit v7x's 64 MiB VMEM at these widths).
    return max(8, min(n, min(1024, _round_up((n + 1) // 2, 8))))


# ----------------------------------------------------------------------------
# Wrappers around pallas_call
# ----------------------------------------------------------------------------
def wavelet_decompose(x_enc, scales):
    """HFWaveletProcessor.decompose_input: avg_pool1d(kernel=stride=scale)."""
    B, L, F = x_enc.shape
    pool_scales = tuple(s for s in scales if s > 1 and L >= s)

    pooled_by_scale = {}
    if pool_scales:
        for s in pool_scales:
            # module always uses scales = 2**i, required for hierarchical pooling
            assert s & (s - 1) == 0, "fused wavelet kernel expects power-of-2 scales"
        max_scale = max(pool_scales)

        # optional seq-chunk grid axis (v7x: keeps both TCs busy when B is
        # small).  chunk_len must be a multiple of 8*max_scale so every output
        # block stays (8,128)-legal; otherwise fall back to a single chunk.
        nchunks = 1
        for cand in (8, 4, 2):
            if L % cand == 0 and (L // cand) % (8 * max_scale) == 0:
                nchunks = cand
                break
        chunk_len = L // nchunks

        def idx3(b, c):
            return (b, c, 0)

        itemsize = x_enc.dtype.itemsize
        out_bytes = sum(B * (L // s) * F * itemsize for s in pool_scales)
        cost = pl.CostEstimate(
            flops=int(B * L * F * len(pool_scales)),
            transcendentals=0,
            bytes_accessed=int(x_enc.size * itemsize + out_bytes),
        )

        pooled = pl.pallas_call(
            _make_wavelet_pool_kernel(chunk_len, pool_scales, F),
            out_shape=tuple(
                jax.ShapeDtypeStruct((B, L // s, F), x_enc.dtype)
                for s in pool_scales
            ),
            grid=(B, nchunks),
            # real feature width F (no 128-lane padding, no wrapper pad/slice
            # passes); full-array last dim below 128 is legal.
            in_specs=[pl.BlockSpec((None, chunk_len, F), idx3)],
            out_specs=tuple(
                pl.BlockSpec((None, chunk_len // s, F), idx3)
                for s in pool_scales
            ),
            compiler_params=pltpu.CompilerParams(
                dimension_semantics=("parallel", "parallel")),
            cost_estimate=cost,
        )(x_enc)
        if not isinstance(pooled, (tuple, list)):
            pooled = (pooled,)
        for s, arr in zip(pool_scales, pooled):
            pooled_by_scale[s] = arr

    decomposed = []
    for s in scales:
        if s == 1 or L < s:
            # scale==1 pooling is the identity; seq_len < scale keeps x as-is
            decomposed.append(x_enc)
        else:
            decomposed.append(pooled_by_scale[s])
    return decomposed


def backbone_and_quantile_expansion(fp, x_dec, x_mark_dec, pred_len):
    """Backbone stand-in (Linear->GELU->Linear) with the quantile-expansion
    Linear folded into the second matmul and the decoder concat folded into
    the first matmul (x @ w1_dec + m @ w1_mark) -- both exact fusions."""
    B = x_dec.shape[0]
    enc_in = x_dec.shape[-1]
    mark_dim = x_mark_dec.shape[-1]
    d_model = fp["w1_dec"].shape[1]
    out_dim = fp["w2q"].shape[1]
    compute_dtype = fp["w1_dec"].dtype
    N = B * pred_len

    # glue: last pred_len decoder steps flattened to rows; the f32->bf16 cast
    # fuses into the slice so only bf16 activations reach HBM for the kernel.
    x2d = x_dec[:, -pred_len:, :].reshape(N, enc_in).astype(compute_dtype)
    m2d = x_mark_dec[:, -pred_len:, :].reshape(N, mark_dim).astype(compute_dtype)

    tile = _pick_row_tile(N)
    Np = _round_up(N, tile)
    if Np != N:
        x2d = jnp.pad(x2d, ((0, Np - N), (0, 0)))
        m2d = jnp.pad(m2d, ((0, Np - N), (0, 0)))

    a_item = jnp.dtype(compute_dtype).itemsize
    w_bytes = ((fp["w1_dec"].size + fp["w1_mark"].size + fp["w2q"].size) * a_item
               + (fp["b1"].size + fp["b2q"].size) * 4)
    cost = pl.CostEstimate(
        flops=int(2 * Np * d_model * (enc_in + mark_dim + out_dim)),
        transcendentals=int(Np * d_model),
        bytes_accessed=int((x2d.size + m2d.size) * a_item + w_bytes
                           + Np * out_dim * 4),
    )

    # VMEM budget: double-buffered activation/output blocks + single-buffered
    # weights; set an explicit limit only when the scoped default (32 MiB on
    # v7x) would be exceeded, staying well under 64 MiB physical.
    need = (2 * tile * (enc_in + mark_dim) * a_item
            + 2 * tile * (d_model + out_dim) * 4 + w_bytes)
    ck = dict(dimension_semantics=("parallel",))
    if need > 24 * 2**20:
        ck["vmem_limit_bytes"] = int(min(2 * need, 60 * 2**20))

    def rows(i):
        return (i, 0)

    out2d = pl.pallas_call(
        _backbone_quantile_kernel,
        out_shape=jax.ShapeDtypeStruct((Np, out_dim), jnp.float32),
        grid=(Np // tile,),
        in_specs=[
            pl.BlockSpec((tile, enc_in), rows),
            pl.BlockSpec((tile, mark_dim), rows),
            _const_weight_spec((enc_in, d_model)),
            _const_weight_spec((mark_dim, d_model)),
            _const_weight_spec((1, d_model)),
            _const_weight_spec((d_model, out_dim)),
            _const_weight_spec((1, out_dim)),
        ],
        # output written at its real width: no 128-lane pad and no post-call
        # un-pad slice copy (masked stores on the narrow lane dim are fine).
        out_specs=pl.BlockSpec((tile, out_dim), rows),
        compiler_params=pltpu.CompilerParams(**ck),
        cost_estimate=cost,
    )(x2d, m2d, fp["w1_dec"], fp["w1_mark"], fp["b1"], fp["w2q"], fp["b2q"])

    if Np != N:
        out2d = out2d[:N]
    return out2d.reshape(B, pred_len, out_dim)


# ----------------------------------------------------------------------------
# Module-level forward (HFEnhancedAutoformerAdvanced.forward semantics with
# use_wavelets=True, uncertainty_method=None, quantile_levels=[0.1, 0.5, 0.9])
# ----------------------------------------------------------------------------
@functools.partial(jax.jit,
                   static_argnames=("pred_len", "scales", "compute_wavelets"))
def hf_enhanced_autoformer_advanced_forward(
    fused_params, x_enc, x_mark_enc, x_dec, x_mark_dec, *,
    pred_len, scales, compute_wavelets=True,
):
    # 1. optional wavelet decomposition.  The reference forward computes it but
    #    its reconstruction block is a `pass`; callers that never consume the
    #    multi-scale inputs can set compute_wavelets=False to skip dead work.
    if compute_wavelets:
        multi_scale_inputs = wavelet_decompose(x_enc, scales)
    else:
        multi_scale_inputs = [x_enc]

    # 2. HF backbone processing (no uncertainty method -> single forward),
    # 3. quantile expansion Linear (pre-fused into the backbone head kernel)
    expanded = backbone_and_quantile_expansion(
        fused_params, x_dec, x_mark_dec, pred_len
    )

    outputs = {"prediction": expanded}
    # 4. wavelet reconstruction: no-op in the reference forward (pass)
    return outputs, multi_scale_inputs


# ----------------------------------------------------------------------------
# Parameters
# ----------------------------------------------------------------------------
def init_params(key, enc_in, mark_dim, d_model, c_out, num_quantiles):
    ks = jax.random.split(key, 6)
    scale = 0.1
    fin = enc_in + mark_dim
    return {
        # backbone stand-in
        "w1": scale * jax.random.normal(ks[0], (fin, d_model), jnp.float32),
        "b1": scale * jax.random.normal(ks[1], (1, d_model), jnp.float32),
        "w2": scale * jax.random.normal(ks[2], (d_model, c_out), jnp.float32),
        "b2": scale * jax.random.normal(ks[3], (1, c_out), jnp.float32),
        # quantile_expansion = nn.Linear(c_out, c_out * num_quantiles)
        "wq": scale * jax.random.normal(
            ks[4], (c_out, c_out * num_quantiles), jnp.float32),
        "bq": scale * jax.random.normal(
            ks[5], (1, c_out * num_quantiles), jnp.float32),
    }


def prepare_fused_params(params, enc_in, compute_dtype=jnp.bfloat16):
    """Fold the quantile-expansion Linear into the backbone head (exact: no
    nonlinearity between w2 and wq), split w1 for the in-kernel concat, and
    cast matmul operands to bf16 (accumulation stays f32 in the kernel).
    Done ONCE outside the traced forward."""
    w2q = params["w2"] @ params["wq"]                  # [d_model, c_out*nq]
    b2q = params["b2"] @ params["wq"] + params["bq"]   # [1, c_out*nq]
    return {
        "w1_dec": params["w1"][:enc_in].astype(compute_dtype),
        "w1_mark": params["w1"][enc_in:].astype(compute_dtype),
        "b1": params["b1"].astype(jnp.float32),
        "w2q": w2q.astype(compute_dtype),
        "b2q": b2q.astype(jnp.float32),
    }


# ----------------------------------------------------------------------------
# Pure-JAX reference (unfused f32 weights, direct per-scale pooling)
# ----------------------------------------------------------------------------
def _reference_forward(params, x_enc, x_dec, x_mark_dec, pred_len, scales):
    B, L, F = x_enc.shape
    ms = []
    for s in scales:
        if L >= s:
            t = L // s
            ms.append(jnp.mean(x_enc[:, : t * s, :].reshape(B, t, s, F), axis=2))
        else:
            ms.append(x_enc)
    dec_in = jnp.concatenate([x_dec, x_mark_dec], axis=-1)[:, -pred_len:, :]
    h = jax.nn.gelu(dec_in @ params["w1"] + params["b1"], approximate=True)
    p = h @ params["w2"] + params["b2"]
    q = p @ params["wq"] + params["bq"]
    return q, ms


if __name__ == "__main__":
    # config (small, consistent with the module)
    B = 2
    seq_len = 16
    label_len = 4
    pred_len = 8
    enc_in = 4
    mark_dim = 4
    d_model = 32
    c_out = 4                      # original_c_out
    quantile_levels = (0.1, 0.5, 0.9)
    num_quantiles = len(quantile_levels)
    n_levels = 3
    scales = tuple(2 ** i for i in range(n_levels))   # (1, 2, 4)

    key = jax.random.PRNGKey(0)
    k1, k2, k3, k4, kp = jax.random.split(key, 5)
    x_enc = jax.random.normal(k1, (B, seq_len, enc_in), jnp.float32)
    x_mark_enc = jax.random.normal(k2, (B, seq_len, mark_dim), jnp.float32)
    x_dec = jax.random.normal(k3, (B, label_len + pred_len, enc_in), jnp.float32)
    x_mark_dec = jax.random.normal(
        k4, (B, label_len + pred_len, mark_dim), jnp.float32)

    params = init_params(kp, enc_in, mark_dim, d_model, c_out, num_quantiles)
    fused_params = prepare_fused_params(params, enc_in)

    outputs, multi_scale = hf_enhanced_autoformer_advanced_forward(
        fused_params, x_enc, x_mark_enc, x_dec, x_mark_dec,
        pred_len=pred_len, scales=scales, compute_wavelets=True,
    )

    pred = jax.block_until_ready(outputs["prediction"])
    multi_scale = [jax.block_until_ready(t) for t in multi_scale]

    # correctness check against a pure-JAX f32 reference
    ref_pred, ref_ms = _reference_forward(
        params, x_enc, x_dec, x_mark_dec, pred_len, scales)
    assert pred.shape == (B, pred_len, c_out * num_quantiles)
    assert [t.shape[1] for t in multi_scale] == [seq_len // s for s in scales]
    # bf16 matmul operands (f32 accumulation) -> loosened tolerance vs f32 ref
    assert bool(jnp.allclose(pred, ref_pred, atol=1e-2, rtol=2e-2))
    for got, want in zip(multi_scale, ref_ms):
        assert bool(jnp.allclose(got, want, atol=1e-5, rtol=1e-5))
    print("KERNEL_OK")
</pallas_src>

<mosaic_0001>
module attributes {stable_mosaic.version = 11 : i64} {
  func.func @kernel(%arg0: i32, %arg1: i32, %arg2: memref<1x16x4xf32, #tpu.memory_space<vmem>>, %arg3: memref<1x8x4xf32, #tpu.memory_space<vmem>>, %arg4: memref<1x4x4xf32, #tpu.memory_space<vmem>>) attributes {dimension_semantics = [#tpu.dimension_semantics<parallel>, #tpu.dimension_semantics<parallel>], iteration_bounds = array<i64: 2, 1>, scalar_prefetch = 0 : i64, scratch_operands = 0 : i64, tpu.core_type = #tpu.core_type<tc>, window_params = [{transform_indices = @transform_0, window_bounds = array<i64: 1, 16, 4>}, {transform_indices = @transform_1, window_bounds = array<i64: 1, 8, 4>}, {transform_indices = @transform_2, window_bounds = array<i64: 1, 4, 4>}]} {
    %c0 = arith.constant 0 : index
    %c0_0 = arith.constant 0 : index
    %c0_1 = arith.constant 0 : index
    %0 = tpu.strided_load %arg2[%c0, %c0_0, %c0_1] {strides = array<i32: 1, 2, 1>} : memref<1x16x4xf32, #tpu.memory_space<vmem>>, vector<1x8x4xf32>
    %1 = vector.shape_cast %0 : vector<1x8x4xf32> to vector<8x4xf32>
    %c0_2 = arith.constant 0 : index
    %c1 = arith.constant 1 : index
    %c0_3 = arith.constant 0 : index
    %2 = tpu.strided_load %arg2[%c0_2, %c1, %c0_3] {strides = array<i32: 1, 2, 1>} : memref<1x16x4xf32, #tpu.memory_space<vmem>>, vector<1x8x4xf32>
    %3 = vector.shape_cast %2 : vector<1x8x4xf32> to vector<8x4xf32>
    %4 = arith.addf %1, %3 : vector<8x4xf32>
    %cst = arith.constant 5.000000e-01 : f32
    %5 = vector.broadcast %cst : f32 to vector<8x4xf32>
    %6 = arith.mulf %4, %5 : vector<8x4xf32>
    %c0_4 = arith.constant 0 : index
    %c0_5 = arith.constant 0 : index
    %c0_6 = arith.constant 0 : index
    %7 = vector.load %arg3[%c0_4, %c0_5, %c0_6] : memref<1x8x4xf32, #tpu.memory_space<vmem>>, vector<1x8x4xf32>
    %8 = vector.shape_cast %7 : vector<1x8x4xf32> to vector<8x4xf32>
    %9 = vector.shape_cast %6 : vector<8x4xf32> to vector<1x8x4xf32>
    tpu.vector_store %arg3[%c0_4, %c0_5, %c0_6], %9 {strides = array<i32>} : memref<1x8x4xf32, #tpu.memory_space<vmem>>, vector<1x8x4xf32>,
    %10 = vector.shape_cast %6 : vector<8x4xf32> to vector<4x2x4xf32>
    %cst_7 = arith.constant dense<0.000000e+00> : vector<4x4xf32>
    %11 = vector.multi_reduction <add>, %10, %cst_7 [1] : vector<4x2x4xf32> to vector<4x4xf32>
    %cst_8 = arith.constant 2.000000e+00 : f32
    %12 = vector.broadcast %cst_8 : f32 to vector<4x4xf32>
    %13 = arith.divf %11, %12 : vector<4x4xf32>
    %c0_9 = arith.constant 0 : index
    %c0_10 = arith.constant 0 : index
    %c0_11 = arith.constant 0 : index
    %14 = vector.load %arg4[%c0_9, %c0_10, %c0_11] : memref<1x4x4xf32, #tpu.memory_space<vmem>>, vector<1x4x4xf32>
    %15 = vector.shape_cast %14 : vector<1x4x4xf32> to vector<4x4xf32>
    %16 = vector.shape_cast %13 : vector<4x4xf32> to vector<1x4x4xf32>
    tpu.vector_store %arg4[%c0_9, %c0_10, %c0_11], %16 {strides = array<i32>} : memref<1x4x4xf32, #tpu.memory_space<vmem>>, vector<1x4x4xf32>,
    return
  }
  func.func @transform_0(%arg0: i32, %arg1: i32) -> (i32, i32, i32) {
    %c0_i32 = arith.constant 0 : i32
    %c0_i32_0 = arith.constant 0 : i32
    return %arg0, %arg1, %c0_i32 : i32, i32, i32
  }
  func.func @transform_1(%arg0: i32, %arg1: i32) -> (i32, i32, i32) {
    %c0_i32 = arith.constant 0 : i32
    %c0_i32_0 = arith.constant 0 : i32
    return %arg0, %arg1, %c0_i32 : i32, i32, i32
  }
  func.func @transform_2(%arg0: i32, %arg1: i32) -> (i32, i32, i32) {
    %c0_i32 = arith.constant 0 : i32
    %c0_i32_0 = arith.constant 0 : i32
    return %arg0, %arg1, %c0_i32 : i32, i32, i32
  }
}

module attributes {stable_mosaic.version = 11 : i64} {
  func.func @_backbone_quantile_kernel(%arg0: i32, %arg1: memref<8x4xbf16, #tpu.memory_space<vmem>>, %arg2: memref<8x4xbf16, #tpu.memory_space<vmem>>, %arg3: memref<4x32xbf16, #tpu.memory_space<vmem>>, %arg4: memref<4x32xbf16, #tpu.memory_space<vmem>>, %arg5: memref<1x32xf32, #tpu.memory_space<vmem>>, %arg6: memref<32x12xbf16, #tpu.memory_space<vmem>>, %arg7: memref<1x12xf32, #tpu.memory_space<vmem>>, %arg8: memref<8x12xf32, #tpu.memory_space<vmem>>) attributes {dimension_semantics = [#tpu.dimension_semantics<parallel>], iteration_bounds = array<i64: 2>, scalar_prefetch = 0 : i64, scratch_operands = 0 : i64, tpu.core_type = #tpu.core_type<tc>, window_params = [{transform_indices = @transform_0, window_bounds = array<i64: 8, 4>}, {transform_indices = @transform_1, window_bounds = array<i64: 8, 4>}, {pipeline_mode = #tpu.pipeline_mode<synchronous>, transform_indices = @transform_2, window_bounds = array<i64: 4, 32>}, {pipeline_mode = #tpu.pipeline_mode<synchronous>, transform_indices = @transform_3, window_bounds = array<i64: 4, 32>}, {pipeline_mode = #tpu.pipeline_mode<synchronous>, transform_indices = @transform_4, window_bounds = array<i64: 1, 32>}, {pipeline_mode = #tpu.pipeline_mode<synchronous>, transform_indices = @transform_5, window_bounds = array<i64: 32, 12>}, {pipeline_mode = #tpu.pipeline_mode<synchronous>, transform_indices = @transform_6, window_bounds = array<i64: 1, 12>}, {transform_indices = @transform_7, window_bounds = array<i64: 8, 12>}]} {
    %c0 = arith.constant 0 : index
    %c0_0 = arith.constant 0 : index
    %0 = vector.load %arg1[%c0, %c0_0] : memref<8x4xbf16, #tpu.memory_space<vmem>>, vector<8x4xbf16>
    %c0_1 = arith.constant 0 : index
    %c0_2 = arith.constant 0 : index
    %1 = vector.load %arg3[%c0_1, %c0_2] : memref<4x32xbf16, #tpu.memory_space<vmem>>, vector<4x32xbf16>
    %cst = arith.constant dense<0.000000e+00> : vector<8x32xf32>
    %2 = tpu.matmul %0, %1, %cst {dimension_numbers = #tpu.dot_dimension_numbers<[1], [0], [0], [1], [0, 0, 1, 1], [], []>} : vector<8x4xbf16>, vector<4x32xbf16>, vector<8x32xf32> -> vector<8x32xf32>
    %c0_3 = arith.constant 0 : index
    %c0_4 = arith.constant 0 : index
    %3 = vector.load %arg2[%c0_3, %c0_4] : memref<8x4xbf16, #tpu.memory_space<vmem>>, vector<8x4xbf16>
    %c0_5 = arith.constant 0 : index
    %c0_6 = arith.constant 0 : index
    %4 = vector.load %arg4[%c0_5, %c0_6] : memref<4x32xbf16, #tpu.memory_space<vmem>>, vector<4x32xbf16>
    %cst_7 = arith.constant dense<0.000000e+00> : vector<8x32xf32>
    %5 = tpu.matmul %3, %4, %cst_7 {dimension_numbers = #tpu.dot_dimension_numbers<[1], [0], [0], [1], [0, 0, 1, 1], [], []>} : vector<8x4xbf16>, vector<4x32xbf16>, vector<8x32xf32> -> vector<8x32xf32>
    %6 = arith.addf %2, %5 : vector<8x32xf32>
    %c0_8 = arith.constant 0 : index
    %c0_9 = arith.constant 0 : index
    %7 = vector.load %arg5[%c0_8, %c0_9] : memref<1x32xf32, #tpu.memory_space<vmem>>, vector<1x32xf32>
    %8 = vector.broadcast %7 : vector<1x32xf32> to vector<8x32xf32>
    %9 = arith.addf %6, %8 : vector<8x32xf32>
    %10 = arith.mulf %9, %9 : vector<8x32xf32>
    %11 = arith.mulf %9, %10 : vector<8x32xf32>
    %cst_10 = arith.constant 4.471500e-02 : f32
    %12 = vector.broadcast %cst_10 : f32 to vector<8x32xf32>
    %13 = arith.mulf %12, %11 : vector<8x32xf32>
    %14 = arith.addf %9, %13 : vector<8x32xf32>
    %cst_11 = arith.constant 0.797884583 : f32
    %15 = vector.broadcast %cst_11 : f32 to vector<8x32xf32>
    %16 = arith.mulf %15, %14 : vector<8x32xf32>
    %17 = math.tanh %16 : vector<8x32xf32>
    %cst_12 = arith.constant 1.000000e+00 : f32
    %18 = vector.broadcast %cst_12 : f32 to vector<8x32xf32>
    %19 = arith.addf %18, %17 : vector<8x32xf32>
    %cst_13 = arith.constant 5.000000e-01 : f32
    %20 = vector.broadcast %cst_13 : f32 to vector<8x32xf32>
    %21 = arith.mulf %20, %19 : vector<8x32xf32>
    %22 = arith.mulf %9, %21 : vector<8x32xf32>
    %23 = arith.truncf %22 : vector<8x32xf32> to vector<8x32xbf16>
    %c0_14 = arith.constant 0 : index
    %c0_15 = arith.constant 0 : index
    %24 = vector.load %arg6[%c0_14, %c0_15] : memref<32x12xbf16, #tpu.memory_space<vmem>>, vector<32x12xbf16>
    %cst_16 = arith.constant dense<0.000000e+00> : vector<8x12xf32>
    %25 = tpu.matmul %23, %24, %cst_16 {dimension_numbers = #tpu.dot_dimension_numbers<[1], [0], [0], [1], [0, 0, 1, 1], [], []>} : vector<8x32xbf16>, vector<32x12xbf16>, vector<8x12xf32> -> vector<8x12xf32>
    %c0_17 = arith.constant 0 : index
    %c0_18 = arith.constant 0 : index
    %26 = vector.load %arg7[%c0_17, %c0_18] : memref<1x12xf32, #tpu.memory_space<vmem>>, vector<1x12xf32>
    %27 = vector.broadcast %26 : vector<1x12xf32> to vector<8x12xf32>
    %28 = arith.addf %25, %27 : vector<8x12xf32>
    %c0_19 = arith.constant 0 : index
    %c0_20 = arith.constant 0 : index
    %29 = vector.load %arg8[%c0_19, %c0_20] : memref<8x12xf32, #tpu.memory_space<vmem>>, vector<8x12xf32>
    tpu.vector_store %arg8[%c0_19, %c0_20], %28 {strides = array<i32>} : memref<8x12xf32, #tpu.memory_space<vmem>>, vector<8x12xf32>,
    return
  }
  func.func @transform_0(%arg0: i32) -> (i32, i32) {
    %c0_i32 = arith.constant 0 : i32
    %c0_i32_0 = arith.constant 0 : i32
    return %arg0, %c0_i32 : i32, i32
  }
  func.func @transform_1(%arg0: i32) -> (i32, i32) {
    %c0_i32 = arith.constant 0 : i32
    %c0_i32_0 = arith.constant 0 : i32
    return %arg0, %c0_i32 : i32, i32
  }
  func.func @transform_2(%arg0: i32) -> (i32, i32) {
    %c0_i32 = arith.constant 0 : i32
    %c0_i32_0 = arith.constant 0 : i32
    %c0_i32_1 = arith.constant 0 : i32
    return %c0_i32, %c0_i32_0 : i32, i32
  }
  func.func @transform_3(%arg0: i32) -> (i32, i32) {
    %c0_i32 = arith.constant 0 : i32
    %c0_i32_0 = arith.constant 0 : i32
    %c0_i32_1 = arith.constant 0 : i32
    return %c0_i32, %c0_i32_0 : i32, i32
  }
  func.func @transform_4(%arg0: i32) -> (i32, i32) {
    %c0_i32 = arith.constant 0 : i32
    %c0_i32_0 = arith.constant 0 : i32
    %c0_i32_1 = arith.constant 0 : i32
    return %c0_i32, %c0_i32_0 : i32, i32
  }
  func.func @transform_5(%arg0: i32) -> (i32, i32) {
    %c0_i32 = arith.constant 0 : i32
    %c0_i32_0 = arith.constant 0 : i32
    %c0_i32_1 = arith.constant 0 : i32
    return %c0_i32, %c0_i32_0 : i32, i32
  }
  func.func @transform_6(%arg0: i32) -> (i32, i32) {
    %c0_i32 = arith.constant 0 : i32
    %c0_i32_0 = arith.constant 0 : i32
    %c0_i32_1 = arith.constant 0 : i32
    return %c0_i32, %c0_i32_0 : i32, i32
  }
  func.func @transform_7(%arg0: i32) -> (i32, i32) {
    %c0_i32 = arith.constant 0 : i32
    %c0_i32_0 = arith.constant 0 : i32
    return %arg0, %c0_i32 : i32, i32
  }
}

</mosaic_0001>

<bundles_post_ra>
// kernel: hf_enhanced_autoformer_advanced_forward.2
= control target key start
LH: loop header
LB: loop body
LE: loop exit
PB: predicated region body
PF: predicated region fallthrough
CT: control target
= control target key end

     0   :  { %8 = vsyncpa [#allocation3], 0  ;;  %s678_s0 = inlined_call_operand.vmem [shape: f32[2,16,4], index: 0, kind: input, shape index: {}]   ;;  %s679_s1 = inlined_call_operand.vmem [shape: f32[2,8,4], index: 1, kind: output, shape index: {0}]   ;;  %s680_s2 = inlined_call_operand.hbm [shape: f32[2,4,4], index: 2, kind: output, shape index: {1}]  }
   0x1   :  { %10 = vsyncpa [#allocation3 + $0x1], 0  ;;  %s563_s9 = smov 0   ;;  %s565_s10 = smov 0  }
   0x2   :  { %s567_s11 = smov 0   ;;  %s569_s12 = smov 0  }
   0x3   :  { %s571_s13 = smov 0   ;;  %s573_s14 = smov 0  }
   0x4 LB: > { %s397_s15 = sadd.s32 4294967295, %s544_s14   ;;  %s398_s16 = sadd.s32 4294967294, %s544_s14   ;;  %s544_s14 = sphi %s573_s14, %s16_s14   ;;  %s540_s13 = sphi %s571_s13, %s687_s13   ;;  %s536_s12 = sphi %s569_s12, %s686_s12   ;;  %s532_s11 = sphi %s567_s11, %s685_s11   ;;  %s528_s10 = sphi %s565_s10, %s684_s10   ;;  %s524_s9 = sphi %s563_s9, %s683_s9  }
   0x5   : > { %s28_s17 = sadd.s32 1, %s540_s13  ;;  %s93_s18 = sadd.s32 1, %s532_s11 }
   0x6   : > { %p30_p0 = scmp.ge.s32.totalorder %s28_s17, 2  ;;  %p103_p1 = scmp.ne.s32.totalorder %s532_s11, %s528_s10 }
   0x7   : > { %p104_p2 = scmp.eq.s32.totalorder %s397_s15, 1  ;;  %p109_p3 = scmp.ne.s32.totalorder %s528_s10, %s524_s9 }
   0x8   : > { %s689_s17 = smov (%p30_p0, %s28_s17), 0  ;;  %p110_p5 = scmp.eq.s32.totalorder %s398_s16, 1 }
   0x9   : > { %p603_p4 = por %p104_p2, %p103_p1  ;;  %s88_s20 = ssub.s32 %s540_s13, %s689_s17 }
   0xa   : > { %p401_p6 = scmp.ge.s32.totalorder %s544_s14, 1  ;;  %p91_p7 = scmp.eq.s32.totalorder %s88_s20, 0 }
   0xb   : > { %p610_p8 = por %p110_p5, %p109_p3  ;;  %p141_p9 = scmp.lt.s32.totalorder %s544_s14, 3 }
   0xc   : > { %s616_s22 = scalar_select %p91_p7, %s532_s11, %s93_s18  }
   0xd   : > { %p142_p10 = pnand %p401_p6, %p141_p9 }
   0xe   : > { %p175_p11 = scmp.lt.s32.totalorder (!%p142_p10), %s536_s12, 1  ;;  %s171_s4 = sand.u32 (!%p142_p10), 1, %s528_s10  }
   0xf   : > { %145 = sbr.rel (%p142_p10) target bundleno = 64 (0x40), region = 24  ;;  %s629_s5 = sshll.u32 (!%p142_p10), %s171_s4, 2 }
  0x10   : > { %s173_s6 = scalar_lea.vmem (!%p142_p10), [#allocation2], %s629_s5  ;;  %s408_s8 = sshll.u32 (!%p142_p10), %s536_s12, 6 }
  0x11   : > { %s292_s7 = sshll.u32 (!%p142_p10), %s173_s6, 4  ;;  %s290_s18 = scalar_lea.hbm (!%p142_p10), %s680_s2, %s408_s8  ;;  %s633_s7 = int_to_ptr.vmem [resolvable:$true] %s292_s7 }
  0x12   : > { %s275_s20 = scalar_lea.sflag (!%p142_p10), [#allocation3], %s171_s4 }
  0x14   : > { %v203_v0 = vlaneseq  ;;  %v546_v1 = vmov 1983009808   ;;  %s176_s23 = scalar_select %p175_p11, %s536_s12, 1  ;;  %vm196_vm0 = vcmask 31744   ;;  %vm220_vm1 = vcmask 25600  }
  0x15   : > { %v201_v2 = vunpack.c.l.s4 %v546_v1  ;;  %vm258_vm2 = vcmask 1041409   ;;  %vm260_vm3 = vcmask 1042434   ;;  %vm262_vm4 = vcmask 1043459   ;;  %s547_s12 = smov [#allocation2]  }
  0x16   : > { %v204_v4 = vshrl.u32 %v203_v0, 7  ;;  %s411_s24 = sshll.u32 %s176_s23, 4  ;;  %s405_s28 = sshll.u32 %s176_s23, 3  ;;  %vm265_vm5 = vcmask 27648  }
  0x17   : > { %v202_v3 = vunpack.c.0.s8 %v201_v2  ;;  %s182_s27 = scalar_lea.vmem %s678_s0, %s411_s24  ;;  %s190_s3 = scalar_lea.vmem %s679_s1, %s405_s28 }
  0x18   : > { %v191_v5 = vld [vmem:[%s182_s27] ss:$2 sm:$0xff]  ;;  %v406_v6 = vld [vmem:[%s182_s27 + $0x1] ss:$2 sm:$0xff]  ;;  %s468_s23 = scalar_lea.vmem %s633_s7, 64  ;;  %s472_s24 = sshll.u32 %s547_s12, 4  ;;  %s473_s24 = int_to_ptr.vmem [resolvable:$false] %s472_s24 }
  0x19   : > { %v194_v7 = vadd.f32 %v406_v6, %v191_v5  ;;  %v205_v8 = vsub.s32 %v202_v3, %v204_v4  ;;  %p469_p12 = scmp.ne.s32.totalorder %s633_s7, %s468_s23  ;;  %s474_s25 = scalar_lea.vmem %s473_s24, 128 }
  0x1a   : > { %p475_p1 = scmp.lt.s32.totalorder %s633_s7, %s473_s24  ;;  %p476_p2 = scmp.lt.s32.totalorder %s474_s25, %s468_s23 }
  0x1b   : > { %v195_v9 = vmul.f32 0.5, %v194_v7  ;;  %p470_p13 = pnand %p469_p12, %p603_p4 }
  0x1c   : > { %p477_p3 = por %p476_p2, %p475_p1 }
  0x1d   : > { %v199_v10 = vcombine.high %v195_v9, %v195_v9  ;;  %v206_v11 = vrot.slane %v195_v9, %v205_v8  ;;  %197 = vst.msk [vmem:[%s190_s3] sm:$0xff] %vm196_vm0, %v195_v9  ;;  %p471_p0 = pneg %p470_p13 }
  0x1f   : > { %v213_v12 = vrot.slane %v199_v10, %v205_v8  ;;  %v214_v13 = vcombine.high %v206_v11, %v206_v11  ;;  %v221_v14 = vsel %vm220_vm1, %v206_v11, 0.0  ;;  %p478_p5 = pnand %p477_p3, %p471_p0 }
  0x20   : > { %v222_v15 = vrot.slane %v221_v14, 4 }
  0x21   : > { %v215_v16 = vcombine.high %v213_v12, %v213_v12  ;;  %v228_v17 = vsel %vm220_vm1, %v214_v13, 0.0  ;;  %v235_v18 = vsel %vm220_vm1, %v213_v12, 0.0 }
  0x22   : > { %v223_v19 = vadd.f32 %v222_v15, %v221_v14  ;;  %v229_v20 = vrot.slane %v228_v17, 4  ;;  %v236_v21 = vrot.slane %v235_v18, 4 }
  0x23   : > { %v242_v22 = vsel %vm220_vm1, %v215_v16, 0.0 }
  0x24   : > { %v224_v23 = vrot.slane %v223_v19, 2  ;;  %v230_v24 = vadd.f32 %v229_v20, %v228_v17  ;;  %v237_v25 = vadd.f32 %v236_v21, %v235_v18  ;;  %v243_v26 = vrot.slane %v242_v22, 4 }
  0x26   : > { %v225_v27 = vadd.f32 %v224_v23, %v223_v19  ;;  %v231_v28 = vrot.slane %v230_v24, 2  ;;  %v238_v29 = vrot.slane %v237_v25, 2  ;;  %v244_v30 = vadd.f32 %v243_v26, %v242_v22 }
  0x28   : > { %v226_v31 = vrot.slane %v225_v27, 1  ;;  %v232_v32 = vadd.f32 %v231_v28, %v230_v24  ;;  %v239_v33 = vadd.f32 %v238_v29, %v237_v25  ;;  %v245_v34 = vrot.slane %v244_v30, 2 }
  0x2a   : > { %v227_v35 = vadd.f32 %v226_v31, %v225_v27  ;;  %v233_v36 = vrot.slane %v232_v32, 1  ;;  %v240_v37 = vrot.slane %v239_v33, 1  ;;  %v246_v38 = vadd.f32 %v245_v34, %v244_v30 }
  0x2c   : > { %v234_v39 = vadd.f32 %v233_v36, %v232_v32  ;;  %v241_v40 = vadd.f32 %v240_v37, %v239_v33  ;;  %v247_v41 = vrot.slane %v246_v38, 1  ;;  %v250_v42 = vmul.f32 0.5, %v227_v35 }
  0x2e   : > { %v248_v43 = vadd.f32 %v247_v41, %v246_v38  ;;  %v251_v44 = vmul.f32 0.5, %v234_v39  ;;  %v252_v45 = vmul.f32 0.5, %v241_v40 }
  0x30   : > { %v253_v46 = vmul.f32 0.5, %v248_v43  ;;  %v259_v47 = vsel %vm258_vm2, %v251_v44, %v250_v42 }
  0x31   : > { %v261_v48 = vsel %vm260_vm3, %v252_v45, %v259_v47 }
  0x32   : > { %v263_v49 = vsel %vm262_vm4, %v253_v46, %v261_v48 }
  0x33   : > { %266 = vst.msk [vmem:[%s173_s6] sm:$0xf] %vm265_vm5, %v263_v49 }
  0x34   : > { %481 = shalt.err (!%p478_p5)
}
  0x35   : > { %s482_s26 = scalar_lea.hbm %s290_s18, 64  ;;  %s486_s29 = scalar_lea.hbm %s680_s2, 128 }
  0x36   : > { %p483_p6 = scmp.ne.s32.totalorder %s290_s18, %s482_s26  ;;  %p487_p10 = scmp.lt.s32.totalorder %s290_s18, %s680_s2 }
  0x37   : > { %p488_p11 = scmp.lt.s32.totalorder %s486_s29, %s482_s26 }
  0x38   : > { %p484_p7 = pnand %p483_p6, %p603_p4 }
  0x39   : > { %p489_p12 = por %p488_p11, %p487_p10 }
  0x3a   : > { %p485_p9 = pneg %p484_p7 }
  0x3c   : > { %p490_p13 = pnand %p489_p12, %p485_p9 }
  0x3e   : > { %493 = shalt.err (!%p490_p13)
}
  0x3f   : > { %412 = dma.vmem_to_hbm [thread:$0]  (%p603_p4), %s633_s7, 64, %s290_s18, %s275_s20  }
  0x40 PF: > { %p418_p0 = scmp.ge.s32.totalorder %s544_s14, 2  ;;  %s314_s4 = sand.u32 1, %s524_s9  }
  0x41   : > { %s315_s5 = scalar_lea.sflag [#allocation3], %s314_s4 }
  0x42   : > { %p415_p1 = pnand %p418_p0, %p610_p8 }
  0x44   : > { %p416_p2 = pneg %p415_p1 }
  0x46   : > { %519 = dma.done.wait (%p416_p2), %s315_s5, 64  }
  0x47   : > { %521 = vsyncadd (%p416_p2), %s315_s5, 4294967232  ;;  %s16_s14 = sadd.s32 1, %s544_s14   ;;  %s683_s9 = smov %s528_s10 }
  0x48   : > { %p13_p3 = scmp.ge.s32.totalorder %s16_s14, 4   ;;  %s684_s10 = smov %s532_s11 }
  0x49   : > { %s685_s11 = smov %s616_s22  ;;  %s686_s12 = smov %s540_s13 }
  0x4a   : > { %s687_s13 = smov %s689_s17  ;;  %15 = sbr.rel (!%p13_p3) target bundleno = 4 (0x4), region = 72 }
  0x4f   :  { %320 = vsyncpa [#allocation3], 1 }
  0x50   :  { %322 = vsyncpa [#allocation3 + $0x1], 1 }

// kernel: hf_enhanced_autoformer_advanced_forward.3
= control target key start
LH: loop header
LB: loop body
LE: loop exit
PB: predicated region body
PF: predicated region fallthrough
CT: control target
= control target key end

     0   :  { %12 = vsyncpa [#allocation3], 0  ;;  %s877_s0 = inlined_call_operand.vmem [shape: bf16[16,4], index: 0, kind: input, shape index: {}]   ;;  %s878_s1 = inlined_call_operand.vmem [shape: bf16[16,4], index: 1, kind: input, shape index: {}]   ;;  %s879_s2 = inlined_call_operand.vmem [shape: bf16[4,32], index: 2, kind: input, shape index: {}]   ;;  %s880_s3 = inlined_call_operand.vmem [shape: bf16[4,32], index: 3, kind: input, shape index: {}]   ;;  %s881_s4 = inlined_call_operand.vmem [shape: f32[1,32], index: 4, kind: input, shape index: {}]   ;;  %s882_s5 = inlined_call_operand.vmem [shape: bf16[32,12], index: 5, kind: input, shape index: {}]   ;;  %s883_s6 = inlined_call_operand.vmem [shape: f32[1,12], index: 6, kind: input, shape index: {}]   ;;  %s884_s7 = inlined_call_operand.hbm [shape: f32[16,12], index: 7, kind: output, shape index: {}]  }
   0x1   :  { %14 = vsyncpa [#allocation3 + $0x1], 0  ;;  %s757_s24 = smov 0   ;;  %s759_s25 = smov 0  }
   0x2   :  { %s761_s26 = smov 0   ;;  %s763_s27 = smov 0  }
   0x3 LB: > { %s778_s28 = sadd.s32 4294967295, %s712_s27   ;;  %s562_s29 = sadd.s32 4294967294, %s712_s27   ;;  %s712_s27 = sphi %s763_s27, %s890_s27   ;;  %s708_s26 = sphi %s761_s26, %s889_s26   ;;  %s704_s25 = sphi %s759_s25, %s888_s25   ;;  %s700_s24 = sphi %s757_s24, %s887_s24  }
   0x4   : > { %s782_s30 = sadd.s32 1, %s712_s27   ;;  %s184_s8 = sadd.s32 1, %s708_s26 }
   0x5   : > { %s181_s9 = ssub.s32 %s712_s27, %s782_s30  ;;  %p194_p0 = scmp.ne.s32.totalorder %s708_s26, %s704_s25 }
   0x6   : > { %p182_p1 = scmp.eq.s32.totalorder %s181_s9, 0  ;;  %p195_p2 = scmp.eq.s32.totalorder %s778_s28, 1 }
   0x7   : > { %p200_p3 = scmp.ne.s32.totalorder %s704_s25, %s700_s24  ;;  %p201_p4 = scmp.eq.s32.totalorder %s562_s29, 1 }
   0x8   : > { %s793_s10 = scalar_select %p182_p1, %s708_s26, %s184_s8  }
   0x9   : > { %p795_p5 = por %p195_p2, %p194_p0  ;;  %p799_p6 = por %p201_p4, %p200_p3 }
   0xa   : > { %p565_p7 = scmp.ge.s32.totalorder %s712_s27, 1  ;;  %p248_p8 = scmp.lt.s32.totalorder %s712_s27, 3 }
   0xc   : > { %p249_p9 = pnand %p565_p7, %p248_p8 }
   0xd   : > { %p283_p10 = scmp.lt.s32.totalorder (!%p249_p9), %s778_s28, 1  ;;  %s716_s14 = smov (!%p249_p9), [#allocation2]  }
   0xe   : > { %252 = sbr.rel (%p249_p9) target bundleno = 463 (0x1cf), region = 48  ;;  %s656_s15 = sshll.u32 (!%p249_p9), %s716_s14, 4  ;;  %s657_s15 = int_to_ptr.vmem [resolvable:$false] %s656_s15 }
   0xf   : > { %s658_s16 = scalar_lea.vmem (!%p249_p9), %s657_s15, 256 }
  0x13   : > { %v295_v0 = vld [vmem:[%s880_s3] sm:$0x3]  ;;  %vm300_vm0 = vcmask 1041408   ;;  %v714_v2 = vmov 0.0   ;;  %vm715_vm1 = vmmov 0   ;;  %s284_s17 = scalar_select %p283_p10, %s778_s28, 1 }
  0x14   : > { %v293_v1 = vld [vmem:[%s879_s2] sm:$0x3]  ;;  %587 = vmatprep.subr.bf16.mxu0 %v714_v2  ;;  %593 = vmatprep.subr.bf16.mxu1 %v714_v2  ;;  %v302_v3 = vsel %vm300_vm0, %v295_v0, 0  ;;  %vm296_vm2 = vcmask 31744   ;;  %v648_v7 = vld [vmem:[%s882_s5 + $0x8] sm:$0xff]   ;;  %vm431_vm3 = vcmask 261120  }
  0x15   : > { %v348_v4 = vsel %vm300_vm0, %v293_v1, 0  ;;  %588 = vmatpush3.bf16.msra.mxu0 %v302_v3  ;;  %589 = vmatprep.mubr.msk.bf16.mxu0 %vm715_vm1, %v714_v2  ;;  %s567_s18 = sshll.u32 %s284_s17, 2  ;;  %v649_v8 = vld [vmem:[%s882_s5] sm:$0xff]   ;;  %s280_s17 = sand.u32 1, %s704_s25   ;;  %vm475_vm4 = vcmask 97280  }
  0x16   : > { %594 = vmatpush3.bf16.msra.mxu1 %v348_v4  ;;  %595 = vmatprep.mubr.msk.bf16.mxu1 %vm715_vm1, %v714_v2  ;;  %s290_s21 = scalar_lea.vmem %s878_s1, %s567_s18  ;;  %s286_s29 = scalar_lea.vmem %s877_s0, %s567_s18  ;;  %v571_v11 = vld [vmem:[%s881_s4] ss:$0 sm:$0xff] }
  0x17   : > { %599 = vmatprep.subr.bf16.mxu0 %v714_v2  ;;  %v294_v5 = vld [vmem:[%s290_s21] sm:$0xf]  ;;  %s566_s18 = sshll.u32 %s280_s17, 3  ;;  %s577_s21 = sshll.u32 %s778_s28, 7 }
  0x18   : > { %v292_v6 = vld [vmem:[%s286_s29] sm:$0xf]  ;;  %590 = vmatmul.mubr.msk.bf16.vlgmr.msra.gmra.mxu0 %vm296_vm2, %v294_v5  ;;  %s282_s22 = scalar_lea.vmem [#allocation2], %s566_s18  ;;  %s836_s9 = scalar_lea.hbm %s884_s7, %s577_s21 }
  0x19   : > { %596 = vmatmul.mubr.msk.bf16.vlgmr.msra.gmra.mxu1 %vm296_vm2, %v292_v6  ;;  %603 = vmatprep.mubr.msk.bf16.mxu0 %vm715_vm1, %v714_v2  ;;  %v572_v30 = vld [vmem:[%s883_s6] ss:$0 sm:$0xff]  ;;  %s491_s23 = sshll.u32 %s282_s22, 4  ;;  %s478_s13 = scalar_lea.sflag [#allocation3], %s280_s17  ;;  %s838_s23 = int_to_ptr.vmem [resolvable:$true] %s491_s23 }
  0x1a   : > { %600 = vmatpush3.bf16.msra.mxu0 %v648_v7  ;;  %s652_s28 = scalar_lea.vmem %s838_s23, 128  ;;  %p659_p0 = scmp.lt.s32.totalorder %s838_s23, %s657_s15 }
  0x1b   : > { %601 = vmatprep.subr.bf16.mxu0 %v714_v2  ;;  %p653_p11 = scmp.ne.s32.totalorder %s838_s23, %s652_s28  ;;  %p660_p1 = scmp.lt.s32.totalorder %s658_s16, %s652_s28 }
  0x1d   : > { %p654_p12 = pnand %p653_p11, %p795_p5  ;;  %p661_p2 = por %p660_p1, %p659_p0 }
  0x1e   : > { %602 = vmatpush3.bf16.msra.mxu0 %v649_v8 }
  0x1f   : > { %p655_p13 = pneg %p654_p12 }
  0x21   : > { %p662_p3 = pnand %p661_p2, %p655_p13 }
  0xd8   : > { %v338_v9 = vpop.f32.mrf.mxu0 }
  0xd9   : > { %v384_v10 = vpop.f32.mrf.mxu1 }
  0xda   : > { %v385_v12 = vadd.f32 %v384_v10, %v338_v9  ;;  %v591_v13 = vpop.f32.mrf.mxu0 }
  0xdb   : > { %v597_v14 = vpop.f32.mrf.mxu1 }
  0xdc   : > { %v397_v15 = vadd.f32 %v571_v11, %v385_v12  ;;  %v341_v16 = vpop.f32.mrf.mxu0 }
  0xdd   : > { %v387_v17 = vpop.f32.mrf.mxu1 }
  0xde   : > { %v398_v18 = vmul.f32 %v397_v15, %v397_v15  ;;  %v592_v19 = vpop.f32.mrf.mxu0 }
  0xdf   : > { %v598_v20 = vpop.f32.mrf.mxu1 }
  0xe0   : > { %v399_v21 = vmul.f32 %v398_v18, %v397_v15 }
  0xe2   : > { %v400_v22 = vmul.f32 0.044715, %v399_v21 }
  0xe4   : > { %v401_v23 = vadd.f32 %v400_v22, %v397_v15 }
  0xe6   : > { %v402_v24 = vmul.f32 0.7978846, %v401_v23 }
  0xe8   : > { %650 = vtanh.f32 %v402_v24 }
  0xf5   : > { %v651_v25 = vpop.eup %650 }
  0xf6   : > { %v404_v26 = vadd.f32 1.0, %v651_v25 }
  0xf8   : > { %v405_v27 = vmul.f32 0.5, %v404_v26 }
  0xfa   : > { %v406_v28 = vmul.f32 %v405_v27, %v397_v15 }
  0xfc   : > { %v407_v29 = vpack.c.bf16 %v406_v28, %v406_v28 }
  0xfe   : > { %604 = vmatmul.mubr.msk.bf16.vlgmr.msra.gmra.mxu0 %vm431_vm3, %v407_v29 }
 0x1be   : > { %v469_v31 = vpop.f32.mrf.mxu0 }
 0x1bf   : > { %v470_v32 = vadd.f32 %v572_v30, %v469_v31 }
 0x1c0   : > { %v605_v33 = vpop.f32.mrf.mxu0 }
 0x1c1   : > { %476 = vst.msk [vmem:[%s282_s22] sm:$0xff] %vm475_vm4, %v470_v32 }
 0x1c2   : > { %v472_v34 = vpop.f32.mrf.mxu0 }
 0x1c3   : > { %665 = shalt.err (!%p662_p3)
}
 0x1c4   : > { %s666_s18 = scalar_lea.hbm %s836_s9, 128  ;;  %s670_s20 = scalar_lea.hbm %s884_s7, 256 }
 0x1c5   : > { %p667_p4 = scmp.ne.s32.totalorder %s836_s9, %s666_s18  ;;  %p671_p9 = scmp.lt.s32.totalorder %s836_s9, %s884_s7 }
 0x1c6   : > { %p672_p10 = scmp.lt.s32.totalorder %s670_s20, %s666_s18 }
 0x1c7   : > { %p668_p7 = pnand %p667_p4, %p795_p5 }
 0x1c8   : > { %p673_p11 = por %p672_p10, %p671_p9 }
 0x1c9   : > { %p669_p8 = pneg %p668_p7 }
 0x1cb   : > { %p674_p12 = pnand %p673_p11, %p669_p8 }
 0x1cd   : > { %677 = shalt.err (!%p674_p12)
}
 0x1ce   : > { %607 = dma.vmem_to_hbm [thread:$0]  (%p795_p5), %s838_s23, 128, %s836_s9, %s478_s13   ;;  %v606_v35 = vpop.f32.mrf.mxu0 }
 0x1cf PF: > { %p613_p13 = scmp.ge.s32.totalorder %s712_s27, 2  ;;  %s503_s29 = sand.u32 1, %s700_s24  }
 0x1d0   : > { %s504_s8 = scalar_lea.sflag [#allocation3], %s503_s29 }
 0x1d1   : > { %p610_p0 = pnand %p613_p13, %p799_p6 }
 0x1d3   : > { %p611_p1 = pneg %p610_p0 }
 0x1d5   : > { %695 = dma.done.wait (%p611_p1), %s504_s8, 128  }
 0x1d6   : > { %697 = vsyncadd (%p611_p1), %s504_s8, 4294967168  ;;  %p17_p2 = scmp.ge.s32.totalorder %s782_s30, 4   ;;  %s887_s24 = smov %s704_s25 }
 0x1d7   : > { %s888_s25 = smov %s708_s26  ;;  %s889_s26 = smov %s793_s10 }
 0x1d8   : > { %s890_s27 = smov %s782_s30  ;;  %19 = sbr.rel (!%p17_p2) target bundleno = 3 (0x3), region = 86 }
 0x1dd   :  { %509 = vsyncpa [#allocation3], 1 }
 0x1de   :  { %511 = vsyncpa [#allocation3 + $0x1], 1 }

</bundles_post_ra>
